<compile_context>
chip_gen: v6e
topology: v6e:2x2x1
jax: 0.10.0
libtpu: 0.0.40
codegen_flags: <defaults>
</compile_context>

<pallas_src>
import jax
import jax.numpy as jnp
from jax import lax
from jax.experimental import pallas as pl
from jax.experimental.pallas import tpu as pltpu


def actor_last_layer_kernel(x_ref, w_ref, b_ref, o_ref):
    # x_ref: (TB, D), w_ref: (D, A), b_ref: (1, A) f32, o_ref: (TB, A)
    z = lax.dot_general(
        x_ref[...],
        w_ref[...],
        dimension_numbers=(((1,), (0,)), ((), ())),
        preferred_element_type=jnp.float32,   # f32 accumulation on the MXU
    )
    z = z + b_ref[...]                        # bias broadcast over rows, f32
    o_ref[...] = jnp.tanh(z).astype(o_ref.dtype)


def _round_up(n, m):
    return ((n + m - 1) // m) * m


def actor_last_layer(x, weight, bias, *, block_b=2048, compute_dtype=None):
    """y = tanh(x @ weight.T + bias).

    x: (B, input_dim); weight: (action_dim, input_dim); bias: (action_dim,).
    compute_dtype: optional narrower dtype (e.g. jnp.bfloat16) for x / W; the
    matmul still accumulates in f32 and the bias+tanh epilogue is f32, and the
    output keeps x's original dtype.
    """
    B, D = x.shape
    A, D2 = weight.shape
    assert D == D2, f"weight expects input_dim={D2}, got x with {D}"

    out_dtype = x.dtype
    if compute_dtype is not None:
        x = x.astype(compute_dtype)
        weight = weight.astype(compute_dtype)

    # Pre-transpose W once in the wrapper (tiny) -> contraction is (TB,D)x(D,A)
    # with no in-kernel relayout; bias kept f32 for the f32 epilogue.
    w_t = weight.T                            # (D, A)
    bias2d = bias.astype(jnp.float32).reshape(1, A)

    # --- Tile selection over B (the only tiled axis) -------------------------
    block_b = max(8, _round_up(int(block_b), 8))   # robustness: multiple of 8
    SMALL_B = 256
    if B <= SMALL_B:
        tb = B                                     # single full-array block (legal)
    elif B <= 2 * block_b:
        # >= 2 grid steps so both v7x TensorCores get a block.
        tb = max(256, _round_up(pl.cdiv(B, 2), 8))
    else:
        tb = block_b                               # large B: big tiles, few steps
    grid = (pl.cdiv(B, tb),)

    x_itemsize = jnp.dtype(x.dtype).itemsize
    o_itemsize = jnp.dtype(out_dtype).itemsize
    cost = pl.CostEstimate(
        flops=2 * B * D * A,
        transcendentals=B * A,                     # tanh per output element
        bytes_accessed=(B * D + A * D) * x_itemsize + A * 4 + B * A * o_itemsize,
    )

    return pl.pallas_call(
        actor_last_layer_kernel,
        out_shape=jax.ShapeDtypeStruct((B, A), out_dtype),
        grid=grid,
        in_specs=[
            pl.BlockSpec((tb, D), lambda i: (i, 0)),   # x tile marches over B
            pl.BlockSpec((D, A), lambda i: (0, 0)),    # W^T resident across grid
            pl.BlockSpec((1, A), lambda i: (0, 0)),    # bias resident across grid
        ],
        out_specs=pl.BlockSpec((tb, A), lambda i: (i, 0)),
        compiler_params=pltpu.CompilerParams(
            dimension_semantics=("parallel",),   # shard B-grid across TCs on v7x
        ),
        cost_estimate=cost,
    )(x, w_t, bias2d)


if __name__ == "__main__":
    key = jax.random.PRNGKey(0)
    k_x, k_w, k_b, k_x2 = jax.random.split(key, 4)

    batch = 2
    input_dim = 300
    action_dim = 8

    # Deterministic parameter init mirroring nn.Linear's U(-1/sqrt(in), 1/sqrt(in)).
    bound = 1.0 / (input_dim ** 0.5)
    weight = jax.random.uniform(
        k_w, (action_dim, input_dim), jnp.float32, minval=-bound, maxval=bound
    )
    bias = jax.random.uniform(
        k_b, (action_dim,), jnp.float32, minval=-bound, maxval=bound
    )

    # 1) Small-batch path (single block; matches the nn.Module spec shapes).
    x = jax.random.normal(k_x, (batch, input_dim), jnp.float32)
    y = actor_last_layer(x, weight, bias)
    jax.block_until_ready(y)
    y_ref = jnp.tanh(x @ weight.T + bias)
    assert y.shape == (batch, action_dim)
    assert jnp.allclose(y, y_ref, atol=1e-5, rtol=1e-5)

    # 2) Large-batch f32 path (>= 2 grid steps -> both v7x TCs get a block).
    big_batch = 2048
    x_big = jax.random.normal(k_x2, (big_batch, input_dim), jnp.float32)
    y_big = actor_last_layer(x_big, weight, bias)
    jax.block_until_ready(y_big)
    y_big_ref = jnp.tanh(x_big @ weight.T + bias)
    assert y_big.shape == (big_batch, action_dim)
    assert jnp.allclose(y_big, y_big_ref, atol=1e-5, rtol=1e-5)

    # 3) bf16-input path: halves the dominant x DMA bytes; f32 accumulation and
    #    f32 bias/tanh keep the result close to the f32 reference.
    y_bf16 = actor_last_layer(x_big, weight, bias, compute_dtype=jnp.bfloat16)
    jax.block_until_ready(y_bf16)
    assert y_bf16.dtype == x_big.dtype
    assert jnp.allclose(y_bf16, y_big_ref, atol=3e-2, rtol=0)

    print("KERNEL_OK")
</pallas_src>

<mosaic_0001>
module attributes {stable_mosaic.version = 11 : i64} {
  func.func @actor_last_layer_kernel(%arg0: i32, %arg1: memref<2x300xf32, #tpu.memory_space<vmem>>, %arg2: memref<300x8xf32, #tpu.memory_space<vmem>>, %arg3: memref<1x8xf32, #tpu.memory_space<vmem>>, %arg4: memref<2x8xf32, #tpu.memory_space<vmem>>) attributes {dimension_semantics = [#tpu.dimension_semantics<parallel>], iteration_bounds = array<i64: 1>, scalar_prefetch = 0 : i64, scratch_operands = 0 : i64, tpu.core_type = #tpu.core_type<tc>, window_params = [{transform_indices = @transform_0, window_bounds = array<i64: 2, 300>}, {pipeline_mode = #tpu.pipeline_mode<synchronous>, transform_indices = @transform_1, window_bounds = array<i64: 300, 8>}, {pipeline_mode = #tpu.pipeline_mode<synchronous>, transform_indices = @transform_2, window_bounds = array<i64: 1, 8>}, {transform_indices = @transform_3, window_bounds = array<i64: 2, 8>}]} {
    %c0 = arith.constant 0 : index
    %c0_0 = arith.constant 0 : index
    %0 = vector.load %arg1[%c0, %c0_0] : memref<2x300xf32, #tpu.memory_space<vmem>>, vector<2x300xf32>
    %c0_1 = arith.constant 0 : index
    %c0_2 = arith.constant 0 : index
    %1 = vector.load %arg2[%c0_1, %c0_2] : memref<300x8xf32, #tpu.memory_space<vmem>>, vector<300x8xf32>
    %cst = arith.constant dense<0.000000e+00> : vector<2x8xf32>
    %2 = tpu.matmul %0, %1, %cst {dimension_numbers = #tpu.dot_dimension_numbers<[1], [0], [0], [1], [0, 0, 1, 1], [], []>} : vector<2x300xf32>, vector<300x8xf32>, vector<2x8xf32> -> vector<2x8xf32>
    %c0_3 = arith.constant 0 : index
    %c0_4 = arith.constant 0 : index
    %3 = vector.load %arg3[%c0_3, %c0_4] : memref<1x8xf32, #tpu.memory_space<vmem>>, vector<1x8xf32>
    %4 = vector.broadcast %3 : vector<1x8xf32> to vector<2x8xf32>
    %5 = arith.addf %2, %4 : vector<2x8xf32>
    %6 = math.tanh %5 : vector<2x8xf32>
    %c0_5 = arith.constant 0 : index
    %c0_6 = arith.constant 0 : index
    %7 = vector.load %arg4[%c0_5, %c0_6] : memref<2x8xf32, #tpu.memory_space<vmem>>, vector<2x8xf32>
    tpu.vector_store %arg4[%c0_5, %c0_6], %6 {strides = array<i32>} : memref<2x8xf32, #tpu.memory_space<vmem>>, vector<2x8xf32>,
    return
  }
  func.func @transform_0(%arg0: i32) -> (i32, i32) {
    %c0_i32 = arith.constant 0 : i32
    %c0_i32_0 = arith.constant 0 : i32
    return %arg0, %c0_i32 : i32, i32
  }
  func.func @transform_1(%arg0: i32) -> (i32, i32) {
    %c0_i32 = arith.constant 0 : i32
    %c0_i32_0 = arith.constant 0 : i32
    %c0_i32_1 = arith.constant 0 : i32
    return %c0_i32, %c0_i32_0 : i32, i32
  }
  func.func @transform_2(%arg0: i32) -> (i32, i32) {
    %c0_i32 = arith.constant 0 : i32
    %c0_i32_0 = arith.constant 0 : i32
    %c0_i32_1 = arith.constant 0 : i32
    return %c0_i32, %c0_i32_0 : i32, i32
  }
  func.func @transform_3(%arg0: i32) -> (i32, i32) {
    %c0_i32 = arith.constant 0 : i32
    %c0_i32_0 = arith.constant 0 : i32
    return %arg0, %c0_i32 : i32, i32
  }
}

</mosaic_0001>

<bundles_post_ra>
// kernel: tpu_custom_call.1
= control target key start
LH: loop header
LB: loop body
LE: loop exit
PB: predicated region body
PF: predicated region fallthrough
CT: control target
= control target key end

     0   :  { %v66_v3 = vlaneseq  ;;  %v333_v5 = vmov 0.0   ;;  %v334_v7 = vmov 1983009808   ;;  %vm335_vm0 = vmmov 0   ;;  %s487_s0 = inlined_call_operand.vmem [shape: f32[2,300], index: 0, kind: input, shape index: {}]   ;;  %s488_s1 = inlined_call_operand.vmem [shape: f32[300,8], index: 1, kind: input, shape index: {}]   ;;  %s489_s2 = inlined_call_operand.vmem [shape: f32[1,8], index: 2, kind: input, shape index: {}]   ;;  %s490_s3 = inlined_call_operand.hbm [shape: f32[2,8], index: 3, kind: output, shape index: {}]  }
   0x1   :  { %v47_v0 = vld [vmem:[%s488_s1 + $0xf8] sm:$0xff]  ;;  %v46_v2 = vld [vmem:[%s488_s1 + $0xf0] sm:$0xff]  ;;  %289 = vmatprep.subr.mxu1 %v333_v5  ;;  %v45_v6 = vld [vmem:[%s488_s1 + $0xe8] sm:$0xff]  ;;  %v64_v8 = vunpack.c.l.s4 %v334_v7  ;;  %301 = vmatprep.mubr.msk.f32.mxu1 %vm335_vm0, %v333_v5  ;;  %vm83_vm1 = vcmask 1043456  }
   0x2   :  { %v31_v1 = vld [vmem:[%s488_s1 + $0x78] sm:$0xff]  ;;  %247 = vmatprep.subr.mxu0 %v47_v0  ;;  %v30_v4 = vld [vmem:[%s488_s1 + $0x70] sm:$0xff]  ;;  %v29_v9 = vld [vmem:[%s488_s1 + $0x68] sm:$0xff]  ;;  %v67_v12 = vshrl.u32 %v66_v3, 7 }
   0x3   :  { %248 = vmatpush3.msra.mxu0 %v31_v1  ;;  %v44_v10 = vld [vmem:[%s488_s1 + $0xe0] sm:$0xff]  ;;  %v65_v11 = vunpack.c.0.s8 %v64_v8  ;;  %v43_v14 = vld [vmem:[%s488_s1 + $0xd8] sm:$0xff]  ;;  %v42_v16 = vld [vmem:[%s488_s1 + $0xd0] sm:$0xff] }
   0x4   :  { %249 = vmatprep.subr.mxu0 %v46_v2  ;;  %v28_v13 = vld [vmem:[%s488_s1 + $0x60] sm:$0xff]  ;;  %v27_v15 = vld [vmem:[%s488_s1 + $0x58] sm:$0xff]  ;;  %v53_v17 = vld [vmem:[%s488_s1 + $0x128] sm:$0xf] }
   0x5   :  { %250 = vmatpush3.msra.mxu0 %v30_v4  ;;  %v68_v18 = vsub.s32 %v65_v11, %v67_v12  ;;  %v26_v19 = vld [vmem:[%s488_s1 + $0x50] sm:$0xff]  ;;  %290 = vmatpush3.msk.msra.mxu1 %vm83_vm1, %v53_v17  ;;  %v52_v20 = vld [vmem:[%s488_s1 + $0x120] sm:$0xff]  ;;  %v41_v21 = vld [vmem:[%s488_s1 + $0xc8] sm:$0xff] }
   0x6   :  { %251 = vmatprep.subr.mxu0 %v45_v6  ;;  %291 = vmatprep.subr.mxu1 %v333_v5  ;;  %v51_v22 = vld [vmem:[%s488_s1 + $0x118] sm:$0xff]  ;;  %v25_v23 = vld [vmem:[%s488_s1 + $0x48] sm:$0xff]  ;;  %v15_v24 = vld [vmem:[%s487_s0] sm:$0x3f] }
   0x7   :  { %252 = vmatpush3.msra.mxu0 %v29_v9  ;;  %292 = vmatpush3.msra.mxu1 %v52_v20  ;;  %v40_v25 = vld [vmem:[%s488_s1 + $0xc0] sm:$0xff]  ;;  %v69_v26 = vrot.slane %v15_v24, %v68_v18  ;;  %v50_v27 = vld [vmem:[%s488_s1 + $0x110] sm:$0xff]  ;;  %v62_v29 = vcombine.high %v15_v24, %v15_v24 }
   0x8   :  { %253 = vmatprep.subr.mxu0 %v44_v10  ;;  %293 = vmatprep.subr.mxu1 %v333_v5  ;;  %v24_v28 = vld [vmem:[%s488_s1 + $0x40] sm:$0xff] }
   0x9   :  { %254 = vmatpush3.msra.mxu0 %v28_v13  ;;  %294 = vmatpush3.msra.mxu1 %v51_v22 }
   0xa   :  { %255 = vmatprep.subr.mxu0 %v43_v14 }
   0xb   :  { %256 = vmatpush3.msra.mxu0 %v27_v15 }
   0xc   :  { %257 = vmatprep.subr.mxu0 %v42_v16 }
   0xd   :  { %258 = vmatpush3.msra.mxu0 %v26_v19 }
   0xe   :  { %259 = vmatprep.subr.mxu0 %v41_v21 }
   0xf   :  { %8 = vsyncpa [#allocation3], 0  ;;  %260 = vmatpush3.msra.mxu0 %v25_v23  ;;  %v39_v30 = vld [vmem:[%s488_s1 + $0xb8] sm:$0xff]  ;;  %295 = vmatprep.subr.mxu1 %v333_v5  ;;  %v77_v31 = vcombine.high %v69_v26, %v69_v26  ;;  %v49_v33 = vld [vmem:[%s488_s1 + $0x108] sm:$0xff]  ;;  %v76_v36 = vrot.slane %v62_v29, %v68_v18  ;;  %vm80_vm2 = vcmask 359424   ;;  %s336_s9 = smov [#allocation2]  }
  0x10   :  { %261 = vmatprep.subr.mxu0 %v40_v25  ;;  %v23_v32 = vld [vmem:[%s488_s1 + $0x38] sm:$0xff]  ;;  %296 = vmatpush3.msra.mxu1 %v50_v27  ;;  %v38_v34 = vld [vmem:[%s488_s1 + $0xb0] sm:$0xff]  ;;  %v48_v37 = vld [vmem:[%s488_s1 + $0x100] sm:$0xff]  ;;  %s236_s10 = sshll.u32 %s336_s9, 4  ;;  %vm228_vm3 = vcmask 58368   ;;  %s237_s10 = int_to_ptr.vmem [resolvable:$true] %s236_s10 }
  0x11   :  { %262 = vmatpush3.msra.mxu0 %v24_v28  ;;  %151 = vmatprep.mubr.f32.mxu0 %v77_v31  ;;  %v22_v35 = vld [vmem:[%s488_s1 + $0x30] sm:$0xff]  ;;  %v37_v38 = vld [vmem:[%s488_s1 + $0xa8] sm:$0xff]  ;;  %v36_v40 = vld [vmem:[%s488_s1 + $0xa0] sm:$0xff]  ;;  %p316_p1 = scmp.lt.s32.totalorder %s237_s10, %s237_s10 }
  0x12   :  { %263 = vmatprep.subr.mxu0 %v39_v30  ;;  %297 = vmatprep.subr.mxu1 %v333_v5  ;;  %v21_v39 = vld [vmem:[%s488_s1 + $0x28] sm:$0xff]  ;;  %v20_v41 = vld [vmem:[%s488_s1 + $0x20] sm:$0xff]  ;;  %v35_v42 = vld [vmem:[%s488_s1 + $0x98] sm:$0xff] }
  0x13   :  { %264 = vmatpush3.msra.mxu0 %v23_v32  ;;  %298 = vmatpush3.msra.mxu1 %v49_v33  ;;  %v19_v43 = vld [vmem:[%s488_s1 + $0x18] sm:$0xff]  ;;  %v34_v44 = vld [vmem:[%s488_s1 + $0x90] sm:$0xff]  ;;  %v33_v46 = vld [vmem:[%s488_s1 + $0x88] sm:$0xff] }
  0x14   :  { %265 = vmatprep.subr.mxu0 %v38_v34  ;;  %299 = vmatprep.subr.mxu1 %v333_v5  ;;  %v18_v45 = vld [vmem:[%s488_s1 + $0x10] sm:$0xff]  ;;  %v17_v47 = vld [vmem:[%s488_s1 + $0x8] sm:$0xff]  ;;  %v32_v48 = vld [vmem:[%s488_s1 + $0x80] sm:$0xff] }
  0x15   :  { %266 = vmatpush3.msra.mxu0 %v22_v35  ;;  %300 = vmatpush3.msra.mxu1 %v48_v37  ;;  %v16_v49 = vld [vmem:[%s488_s1] sm:$0xff]  ;;  %s311_s1 = scalar_lea.vmem %s237_s10, 32 }
  0x16   :  { %267 = vmatprep.subr.mxu0 %v37_v38  ;;  %302 = vmatmul.mubr.msk.f32.vlgmr.msra.gmra.mxu1 %vm80_vm2, %v76_v36  ;;  %v244_v54 = vld [vmem:[%s489_s2] ss:$0 sm:$0xff]  ;;  %p312_p0 = scmp.ne.s32.totalorder %s237_s10, %s311_s1  ;;  %p317_p2 = scmp.lt.s32.totalorder %s311_s1, %s311_s1 }
  0x17   :  { %268 = vmatpush3.msra.mxu0 %v21_v39 }
  0x18   :  { %269 = vmatprep.subr.mxu0 %v36_v40  ;;  %p318_p3 = por %p317_p2, %p316_p1 }
  0x19   :  { %270 = vmatpush3.msra.mxu0 %v20_v41 }
  0x1a   :  { %271 = vmatprep.subr.mxu0 %v35_v42  ;;  %p319_p4 = pnand %p318_p3, %p312_p0 }
  0x1b   :  { %272 = vmatpush3.msra.mxu0 %v19_v43 }
  0x1c   :  { %273 = vmatprep.subr.mxu0 %v34_v44 }
  0x1d   :  { %274 = vmatpush3.msra.mxu0 %v18_v45 }
  0x1e   :  { %275 = vmatprep.subr.mxu0 %v33_v46 }
  0x1f   :  { %276 = vmatpush3.msra.mxu0 %v17_v47 }
  0x20   :  { %277 = vmatprep.subr.mxu0 %v32_v48 }
  0x21   :  { %278 = vmatpush3.msra.mxu0 %v16_v49 }
  0x22   :  { %152 = vmatmul.mubr.f32.vlgmr.msra.gmra.mxu0 %v69_v26 }
  0xd6   :  { %v223_v50 = vpop.f32.mrf.mxu1 }
  0xd8   :  { %v303_v51 = vpop.f32.mrf.mxu1 }
  0xe2   :  { %v279_v52 = vpop.f32.mrf.mxu0 }
  0xe4   :  { %v280_v53 = vpop.f32.mrf.mxu0 }
  0xe5   :  { %v281_v55 = vadd.f32 %v280_v53, %v279_v52 }
  0xe7   :  { %v154_v56 = vadd.f32 %v281_v55, %v244_v54 }
  0xe9   :  { %v224_v57 = vadd.f32 %v223_v50, %v154_v56 }
  0xeb   :  { %309 = vtanh.f32 %v224_v57 }
  0xf8   :  { %v310_v58 = vpop.eup %309 }
  0xf9   :  { %229 = vst.msk [vmem:[#allocation2] sm:$0x3] %vm228_vm3, %v310_v58 }
  0xfa   :  { %322 = shalt.err (!%p319_p4)
}
  0xfb   :  { %239 = dma.vmem_to_hbm [thread:$0]  %s237_s10, 32, %s490_s3, [#allocation3]  }
  0xfc   :  { %331 = dma.done.wait [#allocation3], 32  }
  0xfd   :  { %332 = vsyncadd [#allocation3], 4294967264 }
  0xfe   :  { %243 = vsyncpa [#allocation3], 1 }

</bundles_post_ra>
